<compile_context>
chip_gen: v7x
topology: tpu7x:2x2x1
jax: 0.10.0
libtpu: 0.0.40
codegen_flags: <defaults>
</compile_context>

<pallas_src>
import functools

import jax
import jax.numpy as jnp
from jax.experimental import pallas as pl
from jax.experimental.pallas import tpu as pltpu

_LANES = 128


def _focal_kernel(*refs, gamma, smooth, num_class, s_valid, rows_per_tile,
                  has_alpha):
    if has_alpha:
        logit_ref, target_ref, alpha_ref, out_ref = refs
    else:
        logit_ref, target_ref, out_ref = refs
        alpha_ref = None

    sj = pl.program_id(1)

    logit = logit_ref[...]                      # (C, R, 128) f32
    tgt = target_ref[...]                       # (R, 128)    i32
    c, r, l = logit.shape

    cls = jax.lax.broadcasted_iota(jnp.int32, (c, r, l), 0)
    is_hot = cls == tgt[None, :, :]             # (C, R, 128) bool

    # fused one-hot + label-smoothing clamp: clamp(one_hot, lo, hi)
    lo = jnp.float32(smooth / (num_class - 1))
    hi = jnp.float32(1.0 - smooth)
    one_hot = jnp.where(is_hot, hi, lo)

    pt = jnp.sum(one_hot * logit, axis=0) + jnp.float32(smooth)   # (R, 128)
    logpt = jnp.log(pt)
    one_m = jnp.float32(1.0) - pt

    if gamma == 2.0:                            # VPU multiply, no EUP pow
        focal = one_m * one_m
    elif gamma == 1.0:
        focal = one_m
    else:
        focal = jnp.power(jnp.maximum(one_m, jnp.float32(0.0)),
                          jnp.float32(gamma))

    if has_alpha:
        alpha_s = jnp.sum(jnp.where(is_hot, alpha_ref[...], jnp.float32(0.0)),
                          axis=0)               # (R, 128): alpha[target]
        loss = -(alpha_s * focal * logpt)
    else:                                       # alpha=None -> alpha == 1
        loss = -(focal * logpt)

    # mask ragged tail (spatial positions >= H*W, including 128-pad / OOB rows)
    grow = sj * rows_per_tile + jax.lax.broadcasted_iota(jnp.int32, (r, l), 0)
    lane = jax.lax.broadcasted_iota(jnp.int32, (r, l), 1)
    valid = (grow * l + lane) < s_valid
    loss = jnp.where(valid, loss, jnp.float32(0.0))

    @pl.when(sj == 0)
    def _():
        out_ref[...] = jnp.zeros_like(out_ref)

    out_ref[...] += loss                        # lane-parallel accumulator


def focal_loss(logit_nchw, target, *, gamma=2.0, smooth=1e-5, alpha=None,
               balance_index=0, size_average=True, apply_nonlin=None):
    """logit_nchw: (N, C, H, W) float; target: (N, H, W) or (N, 1, H, W) int."""
    if apply_nonlin is not None:
        logit_nchw = apply_nonlin(logit_nchw)

    n, c = logit_nchw.shape[0], logit_nchw.shape[1]
    s = 1
    for d in logit_nchw.shape[2:]:
        s *= d

    # --- glue: free reshapes only (no NCHW->NHWC transpose, no row pad) ---
    logit = logit_nchw.reshape(n, c, s).astype(jnp.float32)
    tgt = jnp.reshape(target, (n, s)).astype(jnp.int32)

    s_pad = ((s + _LANES - 1) // _LANES) * _LANES
    if s_pad != s:
        # TODO(synk): only hit when H*W is not a multiple of 128 (one copy).
        logit = jnp.pad(logit, ((0, 0), (0, 0), (0, s_pad - s)))
        tgt = jnp.pad(tgt, ((0, 0), (0, s_pad - s)))
    s128 = s_pad // _LANES
    logit = logit.reshape(n, c, s128, _LANES)
    tgt = tgt.reshape(n, s128, _LANES)

    # spatial row-tile: big blocks to amortize grid-step overhead, capped so the
    # logit block stays ~<=2 MiB (safe for v5e/v6e/v7x scoped VMEM, double-buffered).
    max_rows = (2 * 1024 * 1024) // (c * _LANES * 4)
    max_rows = max(8, min(2048, max_rows))
    max_rows = (max_rows // 8) * 8
    if s128 <= max_rows:
        rows, num_tiles = s128, 1
    else:
        rows, num_tiles = max_rows, pl.cdiv(s128, max_rows)

    # alpha handling (matches the PyTorch module)
    if alpha is None:
        alpha_arr = None
    elif isinstance(alpha, float):
        v = jnp.full((c,), 1.0 - alpha, dtype=jnp.float32)
        alpha_arr = v.at[balance_index].set(alpha)
    else:
        v = jnp.asarray(alpha, dtype=jnp.float32).reshape(c)
        alpha_arr = v / v.sum()

    kernel = functools.partial(
        _focal_kernel, gamma=float(gamma), smooth=float(smooth), num_class=c,
        s_valid=s, rows_per_tile=rows, has_alpha=alpha_arr is not None)

    in_specs = [
        pl.BlockSpec((None, c, rows, _LANES), lambda i, j: (i, 0, j, 0)),
        pl.BlockSpec((None, rows, _LANES), lambda i, j: (i, j, 0)),
    ]
    inputs = [logit, tgt]
    if alpha_arr is not None:
        alpha_in = jnp.broadcast_to(alpha_arr.reshape(c, 1, 1),
                                    (c, 1, _LANES)).astype(jnp.float32)
        in_specs.append(pl.BlockSpec((c, 1, _LANES), lambda i, j: (0, 0, 0)))
        inputs.append(alpha_in)

    partial_sums = pl.pallas_call(
        kernel,
        out_shape=jax.ShapeDtypeStruct((n, rows, _LANES), jnp.float32),
        grid_spec=pltpu.PrefetchScalarGridSpec(
            num_scalar_prefetch=0,
            grid=(n, num_tiles),
            in_specs=in_specs,
            out_specs=pl.BlockSpec((None, rows, _LANES), lambda i, j: (i, 0, 0)),
        ),
        compiler_params=pltpu.CompilerParams(
            dimension_semantics=("parallel", "arbitrary"),
            vmem_limit_bytes=32 * 1024 * 1024),
    )(*inputs)

    total = jnp.sum(partial_sums)
    if size_average:
        return total / (n * s)
    return total


if __name__ == "__main__":
    key = jax.random.PRNGKey(0)
    k1, k2 = jax.random.split(key)

    N, C, H, W = 2, 4, 16, 16
    # module default apply_nonlin=None, so feed probabilities directly
    logits_raw = jax.random.normal(k1, (N, C, H, W), dtype=jnp.float32)
    probs = jax.nn.softmax(logits_raw, axis=1)
    target = jax.random.randint(k2, (N, 1, H, W), 0, C, dtype=jnp.int32)

    loss = focal_loss(probs, target, gamma=2.0, smooth=1e-5)
    loss = jax.block_until_ready(loss)

    # pure-JAX reference (same math as the PyTorch module)
    lg = jnp.transpose(probs, (0, 2, 3, 1)).reshape(-1, C)
    tg = target.reshape(-1)
    oh = jax.nn.one_hot(tg, C, dtype=jnp.float32)
    oh = jnp.clip(oh, 1e-5 / (C - 1), 1.0 - 1e-5)
    pt = jnp.sum(oh * lg, axis=1) + 1e-5
    ref = jnp.mean(-jnp.power(1.0 - pt, 2.0) * jnp.log(pt))
    assert jnp.allclose(loss, ref, rtol=1e-5, atol=1e-6), (loss, ref)

    print("KERNEL_OK")
</pallas_src>

<mosaic_0001>
module attributes {stable_mosaic.version = 11 : i64} {
  func.func @_focal_kernel(%arg0: i32, %arg1: i32, %arg2: memref<1x4x2x128xf32, #tpu.memory_space<vmem>>, %arg3: memref<1x2x128xi32, #tpu.memory_space<vmem>>, %arg4: memref<1x2x128xf32, #tpu.memory_space<vmem>>) attributes {dimension_semantics = [#tpu.dimension_semantics<parallel>, #tpu.dimension_semantics<arbitrary>], iteration_bounds = array<i64: 2, 1>, scalar_prefetch = 0 : i64, scratch_operands = 0 : i64, tpu.core_type = #tpu.core_type<tc>, window_params = [{transform_indices = @transform_0, window_bounds = array<i64: 1, 4, 2, 128>}, {transform_indices = @transform_1, window_bounds = array<i64: 1, 2, 128>}, {transform_indices = @transform_2, window_bounds = array<i64: 1, 2, 128>}]} {
    %c0 = arith.constant 0 : index
    %c0_0 = arith.constant 0 : index
    %c0_1 = arith.constant 0 : index
    %c0_2 = arith.constant 0 : index
    %0 = vector.load %arg2[%c0, %c0_0, %c0_1, %c0_2] : memref<1x4x2x128xf32, #tpu.memory_space<vmem>>, vector<1x4x2x128xf32>
    %1 = vector.shape_cast %0 : vector<1x4x2x128xf32> to vector<4x2x128xf32>
    %c0_3 = arith.constant 0 : index
    %c0_4 = arith.constant 0 : index
    %c0_5 = arith.constant 0 : index
    %2 = vector.load %arg3[%c0_3, %c0_4, %c0_5] : memref<1x2x128xi32, #tpu.memory_space<vmem>>, vector<1x2x128xi32>
    %3 = vector.shape_cast %2 : vector<1x2x128xi32> to vector<2x128xi32>
    %4 = tpu.iota {dimensions = array<i32: 0>} : vector<4x2x128xi32>
    %5 = vector.shape_cast %3 : vector<2x128xi32> to vector<1x2x128xi32>
    %6 = vector.broadcast %5 : vector<1x2x128xi32> to vector<4x2x128xi32>
    %7 = arith.cmpi eq, %4, %6 : vector<4x2x128xi32>
    %cst = arith.constant 0.999989986 : f32
    %cst_6 = arith.constant 3.33333332E-6 : f32
    %8 = vector.broadcast %cst : f32 to vector<4x2x128xf32>
    %9 = vector.broadcast %cst_6 : f32 to vector<4x2x128xf32>
    %10 = arith.select %7, %8, %9 : vector<4x2x128xi1>, vector<4x2x128xf32>
    %11 = arith.mulf %10, %1 : vector<4x2x128xf32>
    %cst_7 = arith.constant dense<0.000000e+00> : vector<2x128xf32>
    %12 = vector.multi_reduction <add>, %11, %cst_7 [0] : vector<4x2x128xf32> to vector<2x128xf32>
    %cst_8 = arith.constant 9.99999974E-6 : f32
    %13 = vector.broadcast %cst_8 : f32 to vector<2x128xf32>
    %14 = arith.addf %12, %13 : vector<2x128xf32>
    %15 = math.log %14 : vector<2x128xf32>
    %cst_9 = arith.constant 1.000000e+00 : f32
    %16 = vector.broadcast %cst_9 : f32 to vector<2x128xf32>
    %17 = arith.subf %16, %14 : vector<2x128xf32>
    %18 = arith.mulf %17, %17 : vector<2x128xf32>
    %19 = arith.mulf %18, %15 : vector<2x128xf32>
    %cst_10 = arith.constant 0.000000e+00 : f32
    %20 = vector.broadcast %cst_10 : f32 to vector<2x128xf32>
    %21 = arith.subf %20, %19 : vector<2x128xf32>
    %c2_i32 = arith.constant 2 : i32
    %22 = arith.muli %arg1, %c2_i32 : i32
    %23 = tpu.iota {dimensions = array<i32: 0>} : vector<2x128xi32>
    %24 = vector.broadcast %22 : i32 to vector<2x128xi32>
    %25 = arith.addi %24, %23 : vector<2x128xi32>
    %26 = tpu.iota {dimensions = array<i32: 1>} : vector<2x128xi32>
    %c128_i32 = arith.constant 128 : i32
    %27 = vector.broadcast %c128_i32 : i32 to vector<2x128xi32>
    %28 = arith.muli %25, %27 : vector<2x128xi32>
    %29 = arith.addi %28, %26 : vector<2x128xi32>
    %c256_i32 = arith.constant 256 : i32
    %30 = vector.broadcast %c256_i32 : i32 to vector<2x128xi32>
    %31 = arith.cmpi slt, %29, %30 : vector<2x128xi32>
    %cst_11 = arith.constant 0.000000e+00 : f32
    %32 = vector.broadcast %cst_11 : f32 to vector<2x128xf32>
    %33 = arith.select %31, %21, %32 : vector<2x128xi1>, vector<2x128xf32>
    %c0_i32 = arith.constant 0 : i32
    %34 = arith.cmpi eq, %arg1, %c0_i32 : i32
    %35 = arith.extui %34 : i1 to i32
    %c0_i32_12 = arith.constant 0 : i32
    %36 = arith.cmpi ne, %35, %c0_i32_12 : i32
    scf.if %36 {
      %cst_19 = arith.constant 0.000000e+00 : f32
      %43 = vector.broadcast %cst_19 : f32 to vector<2x128xf32>
      %c0_20 = arith.constant 0 : index
      %c0_21 = arith.constant 0 : index
      %c0_22 = arith.constant 0 : index
      %44 = vector.load %arg4[%c0_20, %c0_21, %c0_22] : memref<1x2x128xf32, #tpu.memory_space<vmem>>, vector<1x2x128xf32>
      %45 = vector.shape_cast %44 : vector<1x2x128xf32> to vector<2x128xf32>
      %46 = vector.shape_cast %43 : vector<2x128xf32> to vector<1x2x128xf32>
      tpu.vector_store %arg4[%c0_20, %c0_21, %c0_22], %46 {strides = array<i32>} : memref<1x2x128xf32, #tpu.memory_space<vmem>>, vector<1x2x128xf32>,
    } else {
    }
    %c0_13 = arith.constant 0 : index
    %c0_14 = arith.constant 0 : index
    %c0_15 = arith.constant 0 : index
    %37 = vector.load %arg4[%c0_13, %c0_14, %c0_15] : memref<1x2x128xf32, #tpu.memory_space<vmem>>, vector<1x2x128xf32>
    %38 = vector.shape_cast %37 : vector<1x2x128xf32> to vector<2x128xf32>
    %39 = arith.addf %38, %33 : vector<2x128xf32>
    %c0_16 = arith.constant 0 : index
    %c0_17 = arith.constant 0 : index
    %c0_18 = arith.constant 0 : index
    %40 = vector.load %arg4[%c0_16, %c0_17, %c0_18] : memref<1x2x128xf32, #tpu.memory_space<vmem>>, vector<1x2x128xf32>
    %41 = vector.shape_cast %40 : vector<1x2x128xf32> to vector<2x128xf32>
    %42 = vector.shape_cast %39 : vector<2x128xf32> to vector<1x2x128xf32>
    tpu.vector_store %arg4[%c0_16, %c0_17, %c0_18], %42 {strides = array<i32>} : memref<1x2x128xf32, #tpu.memory_space<vmem>>, vector<1x2x128xf32>,
    return
  }
  func.func @transform_0(%arg0: i32, %arg1: i32) -> (i32, i32, i32, i32) {
    %c0_i32 = arith.constant 0 : i32
    %c0_i32_0 = arith.constant 0 : i32
    %c0_i32_1 = arith.constant 0 : i32
    return %arg0, %c0_i32, %arg1, %c0_i32_0 : i32, i32, i32, i32
  }
  func.func @transform_1(%arg0: i32, %arg1: i32) -> (i32, i32, i32) {
    %c0_i32 = arith.constant 0 : i32
    %c0_i32_0 = arith.constant 0 : i32
    return %arg0, %arg1, %c0_i32 : i32, i32, i32
  }
  func.func @transform_2(%arg0: i32, %arg1: i32) -> (i32, i32, i32) {
    %c0_i32 = arith.constant 0 : i32
    %c0_i32_0 = arith.constant 0 : i32
    %c0_i32_1 = arith.constant 0 : i32
    return %arg0, %c0_i32, %c0_i32_0 : i32, i32, i32
  }
}

</mosaic_0001>

<bundles_post_ra>
// kernel: tpu_custom_call.1
= control target key start
LH: loop header
LB: loop body
LE: loop exit
PB: predicated region body
PF: predicated region fallthrough
CT: control target
= control target key end

     0   :  { %7 = vsyncpa [#allocation3], 0  ;;  %s872_s0 = inlined_call_operand.hbm [shape: f32[2,4,2,128], index: 0, kind: input, shape index: {}]   ;;  %s873_s1 = inlined_call_operand.hbm [shape: s32[2,2,128], index: 1, kind: input, shape index: {}]   ;;  %s874_s2 = inlined_call_operand.hbm [shape: f32[2,2,128], index: 2, kind: output, shape index: {}]  }
   0x1   :  { %9 = vsyncpa [#allocation3 + $0x1], 0 }
   0x2   :  { %10 = vsyncpa [#allocation6], 0 }
   0x3   :  { %12 = vsyncpa [#allocation6 + $0x1], 0 }
   0x4   :  { %13 = vsyncpa [#allocation4], 0 }
   0x5   :  { %15 = vsyncpa [#allocation4 + $0x1], 0  ;;  %s647_s9 = smov 0   ;;  %s649_s10 = smov 0  }
   0x6   :  { %s651_s11 = smov 0   ;;  %s653_s12 = smov 0  }
   0x7   :  { %s655_s13 = smov 0   ;;  %s657_s14 = smov 0  }
   0x8 LB: > { %s386_s15 = sadd.s32 4294967295, %s623_s14   ;;  %s387_s16 = sadd.s32 4294967294, %s623_s14   ;;  %s623_s14 = sphi %s657_s14, %s21_s14   ;;  %s619_s13 = sphi %s655_s13, %s893_s13   ;;  %s615_s12 = sphi %s653_s12, %s892_s12   ;;  %s611_s11 = sphi %s651_s11, %s891_s11   ;;  %s607_s10 = sphi %s649_s10, %s890_s10   ;;  %s603_s9 = sphi %s647_s9, %s889_s9  }
   0x9   : > { %s33_s17 = sadd.s32 1, %s619_s13  ;;  %s42_s18 = sadd.s32 1, %s611_s11 }
   0xa   : > { %p35_p0 = scmp.ge.s32.totalorder %s33_s17, 2  ;;  %p49_p1 = scmp.ne.s32.totalorder %s611_s11, %s607_s10 }
   0xb   : > { %p50_p2 = scmp.eq.s32.totalorder %s623_s14, 0  ;;  %p55_p3 = scmp.ne.s32.totalorder %s607_s10, %s603_s9 }
   0xc   : > { %s895_s17 = smov (%p35_p0, %s33_s17), 0  ;;  %p56_p5 = scmp.eq.s32.totalorder %s386_s15, 0 }
   0xd   : > { %p688_p4 = por %p50_p2, %p49_p1  ;;  %s37_s20 = ssub.s32 %s619_s13, %s895_s17 }
   0xe   : > { %p107_p6 = scmp.eq.s32.totalorder %s386_s15, 1  ;;  %p40_p7 = scmp.eq.s32.totalorder %s37_s20, 0 }
   0xf   : > { %p694_p8 = por %p56_p5, %p55_p3  ;;  %p113_p10 = scmp.eq.s32.totalorder %s387_s16, 1 }
  0x10   : > { %p698_p9 = por %p107_p6, %p49_p1  ;;  %p421_p13 = scmp.lt.s32.totalorder %s623_s14, 2 }
  0x11   : > { %s878_s21 = scalar_select %p694_p8, 1, 0 }
  0x12   : > { %s879_s22 = scalar_select %p698_p9, 1, 0 }
  0x13   : > { %s703_s23 = scalar_select %p40_p7, %s611_s11, %s42_s18  }
  0x14   : > { %p705_p11 = por %p113_p10, %p55_p3  ;;  %s712_s25 = sand.u32 1, %s611_s11  }
  0x15   : > { %s390_s26 = sshll.u32 %s712_s25, 3  ;;  %s403_s27 = sshll.u32 %s619_s13, 7 }
  0x16   : > { %s880_s24 = scalar_select %p705_p11, 1, 0 }
  0x17   : > { %s719_s30 = scalar_lea.hbm %s872_s0, %s403_s27  ;;  %s137_s3 = scalar_lea.vmem [#allocation2], %s390_s26 }
  0x18   : > { %s145_s4 = sshll.u32 %s137_s3, 4  ;;  %p725_p0 = pnand %p421_p13, %p688_p4  ;;  %s721_s4 = int_to_ptr.vmem [resolvable:$true] %s145_s4 }
  0x19   : > { %s134_s6 = scalar_lea.sflag [#allocation3], %s712_s25  ;;  %s477_s7 = scalar_lea.hbm %s719_s30, 128 }
  0x1a   : > { %p478_p2 = scmp.ne.s32.totalorder %s719_s30, %s477_s7  ;;  %p479_p3 = pneg %p725_p0 }
  0x1b   : > { %s482_s16 = scalar_lea.hbm %s872_s0, 256  ;;  %p483_p4 = scmp.lt.u32.totalorder %s719_s30, %s872_s0 }
  0x1c   : > { %p480_p5 = pnand %p479_p3, %p478_p2  ;;  %p484_p7 = scmp.lt.u32.totalorder %s482_s16, %s477_s7 }
  0x1d   : > { %p486_p13 = scmp.lt.u32.totalorder %s477_s7, %s719_s30 }
  0x1e   : > { %p481_p6 = pneg %p480_p5  ;;  %p485_p10 = por %p484_p7, %p483_p4 }
  0x20   : > { %p487_p12 = por %p486_p13, %p485_p10 }
  0x22   : > { %p488_p1 = pnand %p487_p12, %p481_p6 }
  0x24   : > { %491 = shalt.err (!%p488_p1)
}
  0x25   : > { %s492_s20 = scalar_lea.vmem %s721_s4, 128  ;;  %s625_s26 = smov [#allocation2]  }
  0x26   : > { %p493_p2 = scmp.ne.s32.totalorder %s721_s4, %s492_s20  ;;  %s497_s27 = sshll.u32 %s625_s26, 4  ;;  %s498_s27 = int_to_ptr.vmem [resolvable:$false] %s497_s27 }
  0x27   : > { %s499_s28 = scalar_lea.vmem %s498_s27, 256  ;;  %p500_p9 = scmp.lt.s32.totalorder %s721_s4, %s498_s27 }
  0x28   : > { %p495_p5 = pnand %p493_p2, %p479_p3  ;;  %p501_p4 = scmp.lt.s32.totalorder %s499_s28, %s492_s20 }
  0x2a   : > { %p496_p11 = pneg %p495_p5  ;;  %p502_p7 = por %p501_p4, %p500_p9 }
  0x2c   : > { %p503_p10 = pnand %p502_p7, %p496_p11 }
  0x2e   : > { %506 = shalt.err (!%p503_p10)
}
  0x2f   : > { %s626_s29 = smov 32   ;;  %s627_s3 = smov 2  }
  0x30   : > { %413 = dma.hbm_to_vmem [thread:$0]  (!%p725_p0), %s719_s30, 128, %s721_s4, %s134_s6, %s626_s29, %s626_s29, %s627_s3  }
  0x31   : > { %p172_p12 = scmp.lt.s32.totalorder %s623_s14, 3  ;;  %s393_s7 = sshll.u32 %s712_s25, 1 }
  0x32   : > { %s394_s8 = sshll.u32 %s619_s13, 5  ;;  %p882_p9 = scmp.ge.s32.totalorder %s623_s14, 1 }
  0x33   : > { %s770_s19 = scalar_lea.hbm %s873_s1, %s394_s8  ;;  %s159_s20 = scalar_lea.vmem [#allocation5], %s393_s7 }
  0x34   : > { %p763_p11 = pnand %p882_p9, %p172_p12  ;;  %s167_s26 = sshll.u32 %s159_s20, 4  ;;  %s168_s26 = int_to_ptr.vmem [resolvable:$true] %s167_s26 }
  0x35   : > { %s156_s30 = scalar_lea.sflag [#allocation6], %s712_s25  ;;  %s507_s4 = scalar_lea.hbm %s770_s19, 32 }
  0x36   : > { %s883_s15 = scalar_select %p763_p11, 1, 0 }
  0x37   : > { %p508_p1 = scmp.ne.s32.totalorder %s770_s19, %s507_s4  ;;  %s512_s28 = scalar_lea.hbm %s873_s1, 64 }
  0x38   : > { %p513_p2 = scmp.lt.u32.totalorder %s770_s19, %s873_s1  ;;  %p514_p5 = scmp.lt.u32.totalorder %s512_s28, %s507_s4 }
  0x39   : > { %p510_p6 = pnand %p508_p1, %p479_p3  ;;  %p516_p7 = scmp.lt.u32.totalorder %s507_s4, %s770_s19 }
  0x3a   : > { %p515_p4 = por %p514_p5, %p513_p2 }
  0x3b   : > { %p511_p13 = pneg %p510_p6 }
  0x3c   : > { %p517_p10 = por %p516_p7, %p515_p4 }
  0x3e   : > { %p518_p12 = pnand %p517_p10, %p511_p13 }
  0x40   : > { %521 = shalt.err (!%p518_p12)
}
  0x41   : > { %s522_s25 = scalar_lea.vmem %s168_s26, 32  ;;  %s628_s7 = smov [#allocation5]  }
  0x42   : > { %p523_p9 = scmp.ne.s32.totalorder %s168_s26, %s522_s25  ;;  %s527_s8 = sshll.u32 %s628_s7, 4  ;;  %s528_s8 = int_to_ptr.vmem [resolvable:$false] %s527_s8 }
  0x43   : > { %s529_s16 = scalar_lea.vmem %s528_s8, 64  ;;  %p530_p8 = scmp.lt.s32.totalorder %s168_s26, %s528_s8 }
  0x44   : > { %p525_p1 = pnand %p523_p9, %p479_p3  ;;  %p531_p11 = scmp.lt.s32.totalorder %s529_s16, %s522_s25 }
  0x46   : > { %p526_p6 = pneg %p525_p1  ;;  %p532_p2 = por %p531_p11, %p530_p8 }
  0x48   : > { %p533_p5 = pnand %p532_p2, %p526_p6 }
  0x4a   : > { %536 = shalt.err (!%p533_p5)
}
  0x4b   : > { %416 = dma.hbm_to_vmem [thread:$0]  (!%p725_p0), %s770_s19, 32, %s168_s26, %s156_s30  }
  0x4c   : > { %p884_p13 = scmp.ne.s32.totalorder %s883_s15, 0 }
  0x4d   : > { %s795_s18 = sand.u32 (!%p884_p13), 1, %s607_s10   ;;  %p885_p3 = scmp.ne.s32.totalorder (!%p884_p13), %s878_s21, 0 }
  0x4e   : > { %176 = sbr.rel (%p884_p13) target bundleno = 139 (0x8b), region = 28  ;;  %s396_s20 = sshll.u32 (!%p884_p13), %s795_s18, 3 }
  0x4f   : > { %s179_s4 = scalar_lea.sflag (!%p884_p13), [#allocation3], %s795_s18  ;;  %s182_s6 = scalar_lea.vmem (!%p884_p13), [#allocation2], %s396_s20 }
  0x55   : > { %590 = dma.done.wait (%p885_p3), %s179_s4, 128  }
  0x56   : > { %592 = vsyncadd (%p885_p3), %s179_s4, 4294967168  ;;  %s397_s5 = sshll.u32 %s795_s18, 1  ;;  %s188_s15 = scalar_lea.sflag [#allocation6], %s795_s18 }
  0x57   : > { %s191_s19 = scalar_lea.vmem [#allocation5], %s397_s5 }
  0x58   : > { %594 = dma.done.wait (%p885_p3), %s188_s15, 32  }
  0x59   : > { %596 = vsyncadd (%p885_p3), %s188_s15, 4294967264  ;;  %s809_s26 = scalar_lea.vmem [#allocation7], %s397_s5  ;;  %v629_v0 = vmov 0.0   ;;  %v217_v1 = vld [vmem:[%s182_s6] sm:$0x3]  ;;  %vm234_vm0 = vcmask 1041408   ;;  %v250_v23 = vlaneseq }
  0x5a   : > { %264 = vst [vmem:[%s809_s26] sm:$0x3] %v629_v0  ;;  %v218_v2 = vld [vmem:[%s182_s6 + $0x2] sm:$0x3]  ;;  %v219_v3 = vld [vmem:[%s182_s6 + $0x4] sm:$0x3]  ;;  %s400_s21 = sshll.u32 %s615_s12, 5 }
  0x5b   : > { %v221_v4 = vld [vmem:[%s191_s19] sm:$0x3]  ;;  %v220_v5 = vld [vmem:[%s182_s6 + $0x6] sm:$0x3]  ;;  %v630_v6 = vmov 3.3333333e-06   ;;  %s822_s29 = scalar_lea.hbm %s874_s2, %s400_s21 }
  0x5c   : > { %vm222_vm1 = vcmp.eq.s32.totalorder %v221_v4, 0  ;;  %vm223_vm2 = vcmp.eq.s32.totalorder %v221_v4, 1  ;;  %vm224_vm3 = vcmp.eq.s32.totalorder %v221_v4, 2  ;;  %vm225_vm4 = vcmp.eq.s32.totalorder %v221_v4, 3  ;;  %s282_s30 = sshll.u32 %s809_s26, 4  ;;  %s269_s3 = scalar_lea.sflag [#allocation4], %s795_s18  ;;  %s824_s30 = int_to_ptr.vmem [resolvable:$true] %s282_s30 }
  0x5d   : > { %v226_v7 = vsel %vm222_vm1, 0.99999, %v630_v6  ;;  %v227_v8 = vsel %vm223_vm2, 0.99999, %v630_v6  ;;  %v228_v9 = vsel %vm224_vm3, 0.99999, %v630_v6 }
  0x5e   : > { %v229_v10 = vsel %vm225_vm4, 0.99999, %v630_v6  ;;  %v230_v11 = vmul.f32 %v226_v7, %v217_v1  ;;  %v231_v12 = vmul.f32 %v227_v8, %v218_v2  ;;  %v232_v13 = vmul.f32 %v228_v9, %v219_v3  ;;  %s537_s25 = scalar_lea.vmem %s824_s30, 32  ;;  %p886_p0 = scmp.ne.s32.totalorder %s879_s22, 0 }
  0x5f   : > { %v233_v14 = vmul.f32 %v229_v10, %v220_v5  ;;  %v251_v24 = vshrl.u32 %v250_v23, 7  ;;  %v255_v26 = vand.u32 127, %v250_v23  ;;  %p538_p8 = scmp.ne.s32.totalorder %s824_s30, %s537_s25  ;;  %s631_s12 = smov [#allocation7]  }
  0x60   : > { %v235_v15 = vsel %vm234_vm0, %v230_v11, 0.0  ;;  %v236_v16 = vsel %vm234_vm0, %v231_v12, 0.0  ;;  %v238_v17 = vsel %vm234_vm0, %v232_v13, 0.0  ;;  %s541_s7 = sshll.u32 %s631_s12, 4  ;;  %s542_s7 = int_to_ptr.vmem [resolvable:$false] %s541_s7 }
  0x61   : > { %v237_v18 = vadd.f32 %v236_v16, %v235_v15  ;;  %v240_v19 = vsel %vm234_vm0, %v233_v14, 0.0  ;;  %v256_v27 = vmul.u32 128, %v251_v24  ;;  %v265_v34 = vld [vmem:[%s809_s26] sm:$0x3]  ;;  %p539_p11 = pnand %p538_p8, %p886_p0  ;;  %s543_s8 = scalar_lea.vmem %s542_s7, 64 }
  0x62   : > { %p544_p7 = scmp.lt.s32.totalorder %s824_s30, %s542_s7  ;;  %p545_p10 = scmp.lt.s32.totalorder %s543_s8, %s537_s25 }
  0x63   : > { %v239_v20 = vadd.f32 %v238_v17, %v237_v18  ;;  %v257_v30 = vadd.s32 %v256_v27, %v255_v26  ;;  %p540_p4 = pneg %p539_p11 }
  0x64   : > { %p546_p12 = por %p545_p10, %p544_p7 }
  0x65   : > { %v241_v21 = vadd.f32 %v240_v19, %v239_v20  ;;  %vm258_vm5 = vcmp.lt.s32.totalorder %v257_v30, 256 }
  0x66   : > { %p547_p9 = pnand %p546_p12, %p540_p4 }
  0x67   : > { %v242_v22 = vadd.f32 1e-05, %v241_v21 }
  0x69   : > { %475 = vlog2.f32 %v242_v22  ;;  %v245_v25 = vsub.f32 1.0, %v242_v22 }
  0x6b   : > { %v246_v28 = vmul.f32 %v245_v25, %v245_v25 }
  0x73   : > { %v476_v29 = vpop.eup %475 }
  0x74   : > { %v244_v31 = vmul.f32 0.6931472, %v476_v29 }
  0x76   : > { %v247_v32 = vmul.f32 %v246_v28, %v244_v31 }
  0x78   : > { %v248_v33 = vsub.f32 0.0, %v247_v32 }
  0x7a   : > { %v259_v35 = vsel %vm258_vm5, %v248_v33, 0.0 }
  0x7b   : > { %v266_v36 = vadd.f32 %v265_v34, %v259_v35 }
  0x7d   : > { %267 = vst [vmem:[%s809_s26] sm:$0x3] %v266_v36 }
  0x7e   : > { %550 = shalt.err (!%p547_p9)
}
  0x7f   : > { %s551_s16 = scalar_lea.hbm %s822_s29, 32  ;;  %s555_s4 = scalar_lea.hbm %s874_s2, 64 }
  0x80   : > { %p552_p1 = scmp.ne.s32.totalorder %s822_s29, %s551_s16  ;;  %p556_p5 = scmp.lt.u32.totalorder %s822_s29, %s874_s2 }
  0x81   : > { %p557_p13 = scmp.lt.u32.totalorder %s555_s4, %s551_s16  ;;  %p559_p8 = scmp.lt.u32.totalorder %s551_s16, %s822_s29 }
  0x82   : > { %p553_p6 = pnand %p552_p1, %p886_p0 }
  0x83   : > { %p558_p3 = por %p557_p13, %p556_p5 }
  0x84   : > { %p554_p2 = pneg %p553_p6 }
  0x85   : > { %p560_p11 = por %p559_p8, %p558_p3 }
  0x87   : > { %p561_p4 = pnand %p560_p11, %p554_p2 }
  0x89   : > { %564 = shalt.err (!%p561_p4)
}
  0x8a   : > { %408 = dma.vmem_to_hbm [thread:$0]  (%p886_p0), %s824_s30, 32, %s822_s29, %s269_s3  }
  0x8b PF: > { %s294_s15 = sand.u32 1, %s603_s9   ;;  %p887_p7 = scmp.ne.s32.totalorder %s880_s24, 0 }
  0x8c   : > { %p888_p10 = scmp.ge.s32.totalorder %s623_s14, 2  ;;  %s295_s19 = scalar_lea.sflag [#allocation4], %s294_s15 }
  0x8e   : > { %p418_p12 = pnand %p888_p10, %p887_p7 }
  0x90   : > { %598 = dma.done.wait (!%p418_p12), %s295_s19, 32  }
  0x91   : > { %600 = vsyncadd (!%p418_p12), %s295_s19, 4294967264  ;;  %s21_s14 = sadd.s32 1, %s623_s14   ;;  %s889_s9 = smov %s607_s10 }
  0x92   : > { %p18_p9 = scmp.ge.s32.totalorder %s21_s14, 4   ;;  %s890_s10 = smov %s611_s11 }
  0x93   : > { %s891_s11 = smov %s703_s23  ;;  %s892_s12 = smov %s619_s13 }
  0x94   : > { %s893_s13 = smov %s895_s17  ;;  %20 = sbr.rel (!%p18_p9) target bundleno = 8 (0x8), region = 90 }
  0x9b   :  { %300 = vsyncpa [#allocation3], 1 }
  0x9c   :  { %302 = vsyncpa [#allocation3 + $0x1], 1 }
  0x9d   :  { %303 = vsyncpa [#allocation6], 1 }
  0x9e   :  { %305 = vsyncpa [#allocation6 + $0x1], 1 }
  0x9f   :  { %306 = vsyncpa [#allocation4], 1 }
  0xa0   :  { %308 = vsyncpa [#allocation4 + $0x1], 1 }

</bundles_post_ra>
